<compile_context>
chip_gen: v6e
topology: v6e:2x2x1
jax: 0.10.0
libtpu: 0.0.40
codegen_flags: <defaults>
</compile_context>

<pallas_src>
import jax
import jax.numpy as jnp
from jax.experimental import pallas as pl
from jax.experimental.pallas import tpu as pltpu

LANE = 128


def _round_up(x, m):
    return (x + m - 1) // m * m


def t_lstm_seq_kernel(
    delta_ref,    # (B, HP)        delta_t broadcast across lanes (constant)
    wg_ref,       # (1, HP)        W_gamma weight (transposed, padded)
    bg_ref,       # (1, HP)        W_gamma.bias + b_gamma (padded)
    x_ref,        # (B, DP)        x_t for this grid step (padded)
    wcat_ref,     # (DP+HP, 4HP)   [weight_ih^T ; weight_hh^T], gate-blocked, padded
    bgate_ref,    # (1, 4HP)       bias_ih + bias_hh, gate-blocked, padded
    h0_ref,       # (B, HP)        initial hidden state (padded)
    c0_ref,       # (B, HP)        initial cell state (padded)
    wfc_ref,      # (HP, OP)       fc.weight^T (padded)
    bfc_ref,      # (1, OP)        fc.bias (padded)
    out_ref,      # (B, OP)        per-step output (block index = t)
    h_ref,        # (B, HP)        recurrent hidden state (VMEM-resident output)
    c_ref,        # (B, HP)        recurrent cell state   (VMEM-resident output)
    gamma_ref,    # (B, HP)        scratch: time-decay gate (computed once)
    xh_ref,       # (B, DP+HP)     scratch: fused [x | gamma*h_prev] MXU operand
):
    t = pl.program_id(0)
    HP = h_ref.shape[1]
    DP = x_ref.shape[1]

    @pl.when(t == 0)
    def _init():
        # gamma_t = exp(-relu(W_gamma(delta_t) + b_gamma)); delta_t is fixed by the
        # module, so compute once and keep resident in VMEM across all T steps.
        gamma_pre = delta_ref[...] * wg_ref[...] + bg_ref[...]
        gamma_ref[...] = jnp.exp(-jnp.maximum(gamma_pre, 0.0))
        h_ref[...] = h0_ref[...]
        c_ref[...] = c0_ref[...]

    # Fused MXU operand: [x_t | gamma * h_{t-1}] -> a single K = DP+HP matmul.
    xh_ref[:, :DP] = x_ref[...]
    xh_ref[:, DP:] = gamma_ref[...] * h_ref[...]

    gates = (
        jnp.dot(xh_ref[...], wcat_ref[...], preferred_element_type=jnp.float32)
        + bgate_ref[...]
    )  # (B, 4*HP); gate k occupies lane-aligned columns [k*HP, (k+1)*HP)

    i_g = jax.nn.sigmoid(gates[:, 0 * HP:1 * HP])
    f_g = jax.nn.sigmoid(gates[:, 1 * HP:2 * HP])
    g_g = jnp.tanh(gates[:, 2 * HP:3 * HP])
    o_g = jax.nn.sigmoid(gates[:, 3 * HP:4 * HP])

    c_new = f_g * c_ref[...] + i_g * g_g
    h_new = o_g * jnp.tanh(c_new)

    # Dropout is identity in eval mode.
    # TODO(synk): training-mode dropout masking (p=0.8) not implemented.

    c_ref[...] = c_new
    h_ref[...] = h_new
    out_ref[...] = (
        jnp.dot(h_new, wfc_ref[...], preferred_element_type=jnp.float32)
        + bfc_ref[...]
    )


def t_lstm_forward_seq(packed, x_seq_pad, h0_pad, c0_pad, delta_b):
    """Run T fused time-decayed LSTM steps in one pallas_call.

    Returns (out_seq_pad (T,B,OP), h_final_pad (B,HP), c_final_pad (B,HP)).
    """
    T, B, DP = x_seq_pad.shape
    HP = h0_pad.shape[1]
    OP = packed["w_fc"].shape[1]

    in_specs = [
        pl.BlockSpec((B, HP), lambda t: (0, 0)),            # delta (broadcast)
        pl.BlockSpec((1, HP), lambda t: (0, 0)),            # W_gamma^T
        pl.BlockSpec((1, HP), lambda t: (0, 0)),            # W_gamma.bias + b_gamma
        pl.BlockSpec((None, B, DP), lambda t: (t, 0, 0)),   # x_t streamed per step
        pl.BlockSpec((DP + HP, 4 * HP), lambda t: (0, 0)),  # stacked gate weights
        pl.BlockSpec((1, 4 * HP), lambda t: (0, 0)),        # combined gate bias
        pl.BlockSpec((B, HP), lambda t: (0, 0)),            # h0
        pl.BlockSpec((B, HP), lambda t: (0, 0)),            # c0
        pl.BlockSpec((HP, OP), lambda t: (0, 0)),           # fc.weight^T
        pl.BlockSpec((1, OP), lambda t: (0, 0)),            # fc.bias
    ]
    out_specs = (
        pl.BlockSpec((None, B, OP), lambda t: (t, 0, 0)),   # per-step output
        pl.BlockSpec((B, HP), lambda t: (0, 0)),            # final h (VMEM-resident)
        pl.BlockSpec((B, HP), lambda t: (0, 0)),            # final c (VMEM-resident)
    )
    out_shape = (
        jax.ShapeDtypeStruct((T, B, OP), jnp.float32),
        jax.ShapeDtypeStruct((B, HP), jnp.float32),
        jax.ShapeDtypeStruct((B, HP), jnp.float32),
    )
    scratch_shapes = [
        pltpu.VMEM((B, HP), jnp.float32),       # gamma_t
        pltpu.VMEM((B, DP + HP), jnp.float32),  # fused matmul operand slab
    ]

    flops = int(T * (2 * B * (DP + HP) * 4 * HP + 2 * B * HP * OP + 10 * B * HP))
    transcendentals = int(T * B * 5 * HP + B * HP)
    bytes_accessed = int(
        x_seq_pad.nbytes + h0_pad.nbytes + c0_pad.nbytes + delta_b.nbytes
        + sum(v.nbytes for v in packed.values())
        + T * B * OP * 4 + 2 * B * HP * 4
    )

    return pl.pallas_call(
        t_lstm_seq_kernel,
        out_shape=out_shape,
        grid_spec=pltpu.PrefetchScalarGridSpec(
            num_scalar_prefetch=0,
            grid=(T,),
            in_specs=in_specs,
            out_specs=out_specs,
            scratch_shapes=scratch_shapes,
        ),
        compiler_params=pltpu.CompilerParams(
            dimension_semantics=("arbitrary",),  # carried recurrence over T
        ),
        cost_estimate=pl.CostEstimate(
            flops=flops,
            transcendentals=transcendentals,
            bytes_accessed=bytes_accessed,
        ),
    )(
        delta_b,
        packed["w_gamma_t"],
        packed["b_gamma_total"],
        x_seq_pad,
        packed["w_cat"],
        packed["b_gates"],
        h0_pad,
        c0_pad,
        packed["w_fc"],
        packed["b_fc"],
    )


def init_params(key, input_dim, hidden_dim, output_dim):
    """Deterministic parameter init matching the PyTorch module's shapes."""
    ks = jax.random.split(key, 8)
    s = 0.1
    return {
        # nn.Linear(1, hidden_dim)
        "w_gamma": s * jax.random.normal(ks[0], (hidden_dim, 1), jnp.float32),
        "b_wgamma": s * jax.random.normal(ks[1], (hidden_dim,), jnp.float32),
        # nn.Parameter(torch.zeros(hidden_dim))
        "b_gamma": jnp.zeros((hidden_dim,), jnp.float32),
        # nn.LSTMCell(input_dim, hidden_dim)
        "w_ih": s * jax.random.normal(ks[2], (4 * hidden_dim, input_dim), jnp.float32),
        "w_hh": s * jax.random.normal(ks[3], (4 * hidden_dim, hidden_dim), jnp.float32),
        "b_ih": s * jax.random.normal(ks[4], (4 * hidden_dim,), jnp.float32),
        "b_hh": s * jax.random.normal(ks[5], (4 * hidden_dim,), jnp.float32),
        # nn.Linear(hidden_dim, output_dim)
        "w_fc": s * jax.random.normal(ks[6], (output_dim, hidden_dim), jnp.float32),
        "b_fc": s * jax.random.normal(ks[7], (output_dim,), jnp.float32),
    }


def pack_params(p, input_dim, hidden_dim, output_dim):
    """Pad every feature axis to 128 lanes and stack the two LSTM weights.

    Gate k of the stacked weight/bias occupies columns [k*HP, k*HP + H); padded
    rows/columns are zero so padded lanes of h/c stay exactly zero at runtime.
    """
    D, H, O = input_dim, hidden_dim, output_dim
    DP, HP, OP = _round_up(D, LANE), _round_up(H, LANE), _round_up(O, LANE)

    wg = jnp.zeros((1, HP), jnp.float32).at[0, :H].set(p["w_gamma"][:, 0])
    bg = jnp.zeros((1, HP), jnp.float32).at[0, :H].set(p["b_wgamma"] + p["b_gamma"])

    w_ih_t = p["w_ih"].T            # (D, 4H)
    w_hh_t = p["w_hh"].T            # (H, 4H)
    b_sum = p["b_ih"] + p["b_hh"]   # (4H,)

    w_cat = jnp.zeros((DP + HP, 4 * HP), jnp.float32)
    b_gates = jnp.zeros((1, 4 * HP), jnp.float32)
    for g in range(4):  # PyTorch LSTMCell gate order: i, f, g, o
        w_cat = w_cat.at[:D, g * HP:g * HP + H].set(w_ih_t[:, g * H:(g + 1) * H])
        w_cat = w_cat.at[DP:DP + H, g * HP:g * HP + H].set(w_hh_t[:, g * H:(g + 1) * H])
        b_gates = b_gates.at[0, g * HP:g * HP + H].set(b_sum[g * H:(g + 1) * H])

    w_fc = jnp.zeros((HP, OP), jnp.float32).at[:H, :O].set(p["w_fc"].T)
    b_fc = jnp.zeros((1, OP), jnp.float32).at[0, :O].set(p["b_fc"])

    packed = {
        "w_gamma_t": wg,
        "b_gamma_total": bg,
        "w_cat": w_cat,
        "b_gates": b_gates,
        "w_fc": w_fc,
        "b_fc": b_fc,
    }
    return packed, (DP, HP, OP)


def reference_forward_seq(p, x_seq, h0, c0, delta):
    """Pure-JAX reference: the PyTorch forward applied T times (eval-mode dropout)."""
    H = h0.shape[1]
    gamma = jnp.exp(-jax.nn.relu(delta @ p["w_gamma"].T + p["b_wgamma"] + p["b_gamma"]))
    h, c = h0, c0
    outs = []
    for t in range(x_seq.shape[0]):
        h_cand = gamma * h
        gates = x_seq[t] @ p["w_ih"].T + h_cand @ p["w_hh"].T + p["b_ih"] + p["b_hh"]
        i_g = jax.nn.sigmoid(gates[:, 0 * H:1 * H])
        f_g = jax.nn.sigmoid(gates[:, 1 * H:2 * H])
        g_g = jnp.tanh(gates[:, 2 * H:3 * H])
        o_g = jax.nn.sigmoid(gates[:, 3 * H:4 * H])
        c = f_g * c + i_g * g_g
        h = o_g * jnp.tanh(c)
        outs.append(h @ p["w_fc"].T + p["b_fc"])
    return jnp.stack(outs, axis=0), h, c


if __name__ == "__main__":
    # batch, input_dim, hidden_dim, output_dim, time steps
    B, D, H, O, T = 8, 16, 32, 8, 8

    key = jax.random.PRNGKey(0)
    kp, kx = jax.random.split(key)
    params = init_params(kp, D, H, O)
    packed, (DP, HP, OP) = pack_params(params, D, H, O)

    x_seq = jax.random.normal(kx, (T, B, D), jnp.float32)
    h0 = jnp.zeros((B, H), jnp.float32)
    c0 = jnp.zeros((B, H), jnp.float32)
    delta = jnp.arange(1, B + 1, dtype=jnp.float32)[:, None]     # (B, 1), as in module

    # Zero-pad feature axes to full 128-lane tiles (lane-dense loads/stores).
    x_pad = jnp.zeros((T, B, DP), jnp.float32).at[:, :, :D].set(x_seq)
    h0_pad = jnp.zeros((B, HP), jnp.float32).at[:, :H].set(h0)
    c0_pad = jnp.zeros((B, HP), jnp.float32).at[:, :H].set(c0)
    delta_b = jnp.broadcast_to(delta, (B, HP))                    # lane-broadcast once

    out_pad, h_pad, c_pad = t_lstm_forward_seq(packed, x_pad, h0_pad, c0_pad, delta_b)
    jax.block_until_ready((out_pad, h_pad, c_pad))

    out = out_pad[:, :, :O]
    h_new = h_pad[:, :H]
    c_new = c_pad[:, :H]

    ref_out, ref_h, ref_c = reference_forward_seq(params, x_seq, h0, c0, delta)

    assert jnp.allclose(out, ref_out, atol=1e-4, rtol=1e-4), "output mismatch"
    assert jnp.allclose(h_new, ref_h, atol=1e-4, rtol=1e-4), "hidden state mismatch"
    assert jnp.allclose(c_new, ref_c, atol=1e-4, rtol=1e-4), "cell state mismatch"
    # Padded lanes must remain exactly zero (padding does not leak into state).
    assert jnp.all(h_pad[:, H:] == 0.0) and jnp.all(c_pad[:, H:] == 0.0), "pad leak"

    print("KERNEL_OK")
</pallas_src>

<mosaic_0001>
module attributes {stable_mosaic.version = 11 : i64} {
  func.func @t_lstm_seq_kernel(%arg0: i32, %arg1: memref<8x128xf32, #tpu.memory_space<vmem>>, %arg2: memref<1x128xf32, #tpu.memory_space<vmem>>, %arg3: memref<1x128xf32, #tpu.memory_space<vmem>>, %arg4: memref<1x8x128xf32, #tpu.memory_space<vmem>>, %arg5: memref<256x512xf32, #tpu.memory_space<vmem>>, %arg6: memref<1x512xf32, #tpu.memory_space<vmem>>, %arg7: memref<8x128xf32, #tpu.memory_space<vmem>>, %arg8: memref<8x128xf32, #tpu.memory_space<vmem>>, %arg9: memref<128x128xf32, #tpu.memory_space<vmem>>, %arg10: memref<1x128xf32, #tpu.memory_space<vmem>>, %arg11: memref<1x8x128xf32, #tpu.memory_space<vmem>>, %arg12: memref<8x128xf32, #tpu.memory_space<vmem>>, %arg13: memref<8x128xf32, #tpu.memory_space<vmem>>, %arg14: memref<8x128xf32, #tpu.memory_space<vmem>>, %arg15: memref<8x256xf32, #tpu.memory_space<vmem>>) attributes {dimension_semantics = [#tpu.dimension_semantics<arbitrary>], iteration_bounds = array<i64: 8>, scalar_prefetch = 0 : i64, scratch_operands = 2 : i64, tpu.core_type = #tpu.core_type<tc>, window_params = [{pipeline_mode = #tpu.pipeline_mode<synchronous>, transform_indices = @transform_0, window_bounds = array<i64: 8, 128>}, {pipeline_mode = #tpu.pipeline_mode<synchronous>, transform_indices = @transform_1, window_bounds = array<i64: 1, 128>}, {pipeline_mode = #tpu.pipeline_mode<synchronous>, transform_indices = @transform_2, window_bounds = array<i64: 1, 128>}, {transform_indices = @transform_3, window_bounds = array<i64: 1, 8, 128>}, {pipeline_mode = #tpu.pipeline_mode<synchronous>, transform_indices = @transform_4, window_bounds = array<i64: 256, 512>}, {pipeline_mode = #tpu.pipeline_mode<synchronous>, transform_indices = @transform_5, window_bounds = array<i64: 1, 512>}, {pipeline_mode = #tpu.pipeline_mode<synchronous>, transform_indices = @transform_6, window_bounds = array<i64: 8, 128>}, {pipeline_mode = #tpu.pipeline_mode<synchronous>, transform_indices = @transform_7, window_bounds = array<i64: 8, 128>}, {pipeline_mode = #tpu.pipeline_mode<synchronous>, transform_indices = @transform_8, window_bounds = array<i64: 128, 128>}, {pipeline_mode = #tpu.pipeline_mode<synchronous>, transform_indices = @transform_9, window_bounds = array<i64: 1, 128>}, {transform_indices = @transform_10, window_bounds = array<i64: 1, 8, 128>}, {pipeline_mode = #tpu.pipeline_mode<synchronous>, transform_indices = @transform_11, window_bounds = array<i64: 8, 128>}, {pipeline_mode = #tpu.pipeline_mode<synchronous>, transform_indices = @transform_12, window_bounds = array<i64: 8, 128>}]} {
    %c0_i32 = arith.constant 0 : i32
    %0 = arith.cmpi eq, %arg0, %c0_i32 : i32
    %1 = arith.extui %0 : i1 to i32
    %c0_i32_0 = arith.constant 0 : i32
    %2 = arith.cmpi ne, %1, %c0_i32_0 : i32
    scf.if %2 {
      %c0_33 = arith.constant 0 : index
      %c0_34 = arith.constant 0 : index
      %52 = vector.load %arg1[%c0_33, %c0_34] : memref<8x128xf32, #tpu.memory_space<vmem>>, vector<8x128xf32>
      %c0_35 = arith.constant 0 : index
      %c0_36 = arith.constant 0 : index
      %53 = vector.load %arg2[%c0_35, %c0_36] : memref<1x128xf32, #tpu.memory_space<vmem>>, vector<1x128xf32>
      %54 = vector.broadcast %53 : vector<1x128xf32> to vector<8x128xf32>
      %55 = arith.mulf %52, %54 : vector<8x128xf32>
      %c0_37 = arith.constant 0 : index
      %c0_38 = arith.constant 0 : index
      %56 = vector.load %arg3[%c0_37, %c0_38] : memref<1x128xf32, #tpu.memory_space<vmem>>, vector<1x128xf32>
      %57 = vector.broadcast %56 : vector<1x128xf32> to vector<8x128xf32>
      %58 = arith.addf %55, %57 : vector<8x128xf32>
      %cst_39 = arith.constant 0.000000e+00 : f32
      %59 = vector.broadcast %cst_39 : f32 to vector<8x128xf32>
      %60 = arith.maximumf %58, %59 : vector<8x128xf32>
      %cst_40 = arith.constant 0.000000e+00 : f32
      %61 = vector.broadcast %cst_40 : f32 to vector<8x128xf32>
      %62 = arith.subf %61, %60 : vector<8x128xf32>
      %63 = math.exp %62 : vector<8x128xf32>
      %c0_41 = arith.constant 0 : index
      %c0_42 = arith.constant 0 : index
      %64 = vector.load %arg14[%c0_41, %c0_42] : memref<8x128xf32, #tpu.memory_space<vmem>>, vector<8x128xf32>
      tpu.vector_store %arg14[%c0_41, %c0_42], %63 {strides = array<i32>} : memref<8x128xf32, #tpu.memory_space<vmem>>, vector<8x128xf32>,
      %c0_43 = arith.constant 0 : index
      %c0_44 = arith.constant 0 : index
      %65 = vector.load %arg7[%c0_43, %c0_44] : memref<8x128xf32, #tpu.memory_space<vmem>>, vector<8x128xf32>
      %c0_45 = arith.constant 0 : index
      %c0_46 = arith.constant 0 : index
      %66 = vector.load %arg12[%c0_45, %c0_46] : memref<8x128xf32, #tpu.memory_space<vmem>>, vector<8x128xf32>
      tpu.vector_store %arg12[%c0_45, %c0_46], %65 {strides = array<i32>} : memref<8x128xf32, #tpu.memory_space<vmem>>, vector<8x128xf32>,
      %c0_47 = arith.constant 0 : index
      %c0_48 = arith.constant 0 : index
      %67 = vector.load %arg8[%c0_47, %c0_48] : memref<8x128xf32, #tpu.memory_space<vmem>>, vector<8x128xf32>
      %c0_49 = arith.constant 0 : index
      %c0_50 = arith.constant 0 : index
      %68 = vector.load %arg13[%c0_49, %c0_50] : memref<8x128xf32, #tpu.memory_space<vmem>>, vector<8x128xf32>
      tpu.vector_store %arg13[%c0_49, %c0_50], %67 {strides = array<i32>} : memref<8x128xf32, #tpu.memory_space<vmem>>, vector<8x128xf32>,
    } else {
    }
    %c0 = arith.constant 0 : index
    %c0_1 = arith.constant 0 : index
    %c0_2 = arith.constant 0 : index
    %3 = vector.load %arg4[%c0, %c0_1, %c0_2] : memref<1x8x128xf32, #tpu.memory_space<vmem>>, vector<1x8x128xf32>
    %4 = vector.shape_cast %3 : vector<1x8x128xf32> to vector<8x128xf32>
    %c0_3 = arith.constant 0 : index
    %c0_4 = arith.constant 0 : index
    %5 = vector.load %arg15[%c0_3, %c0_4] : memref<8x256xf32, #tpu.memory_space<vmem>>, vector<8x128xf32>
    tpu.vector_store %arg15[%c0_3, %c0_4], %4 {strides = array<i32>} : memref<8x256xf32, #tpu.memory_space<vmem>>, vector<8x128xf32>,
    %c0_5 = arith.constant 0 : index
    %c0_6 = arith.constant 0 : index
    %6 = vector.load %arg14[%c0_5, %c0_6] : memref<8x128xf32, #tpu.memory_space<vmem>>, vector<8x128xf32>
    %c0_7 = arith.constant 0 : index
    %c0_8 = arith.constant 0 : index
    %7 = vector.load %arg12[%c0_7, %c0_8] : memref<8x128xf32, #tpu.memory_space<vmem>>, vector<8x128xf32>
    %8 = arith.mulf %6, %7 : vector<8x128xf32>
    %c0_9 = arith.constant 0 : index
    %c128 = arith.constant 128 : index
    %9 = vector.load %arg15[%c0_9, %c128] : memref<8x256xf32, #tpu.memory_space<vmem>>, vector<8x128xf32>
    tpu.vector_store %arg15[%c0_9, %c128], %8 {strides = array<i32>} : memref<8x256xf32, #tpu.memory_space<vmem>>, vector<8x128xf32>,
    %c0_10 = arith.constant 0 : index
    %c0_11 = arith.constant 0 : index
    %10 = vector.load %arg15[%c0_10, %c0_11] : memref<8x256xf32, #tpu.memory_space<vmem>>, vector<8x256xf32>
    %c0_12 = arith.constant 0 : index
    %c0_13 = arith.constant 0 : index
    %11 = vector.load %arg5[%c0_12, %c0_13] : memref<256x512xf32, #tpu.memory_space<vmem>>, vector<256x512xf32>
    %cst = arith.constant dense<0.000000e+00> : vector<8x512xf32>
    %12 = tpu.matmul %10, %11, %cst {dimension_numbers = #tpu.dot_dimension_numbers<[1], [0], [0], [1], [0, 0, 1, 1], [], []>} : vector<8x256xf32>, vector<256x512xf32>, vector<8x512xf32> -> vector<8x512xf32>
    %c0_14 = arith.constant 0 : index
    %c0_15 = arith.constant 0 : index
    %13 = vector.load %arg6[%c0_14, %c0_15] : memref<1x512xf32, #tpu.memory_space<vmem>>, vector<1x512xf32>
    %14 = vector.broadcast %13 : vector<1x512xf32> to vector<8x512xf32>
    %15 = arith.addf %12, %14 : vector<8x512xf32>
    %16 = vector.extract_strided_slice %15 {offsets = [0, 0], sizes = [8, 128], strides = [1, 1]} : vector<8x512xf32> to vector<8x128xf32>
    %17 = arith.negf %16 : vector<8x128xf32>
    %18 = math.exp %17 : vector<8x128xf32>
    %cst_16 = arith.constant 1.000000e+00 : f32
    %19 = vector.broadcast %cst_16 : f32 to vector<8x128xf32>
    %20 = arith.addf %19, %18 : vector<8x128xf32>
    %21 = arith.divf %19, %20 : vector<8x128xf32>
    %22 = vector.extract_strided_slice %15 {offsets = [0, 128], sizes = [8, 128], strides = [1, 1]} : vector<8x512xf32> to vector<8x128xf32>
    %23 = arith.negf %22 : vector<8x128xf32>
    %24 = math.exp %23 : vector<8x128xf32>
    %cst_17 = arith.constant 1.000000e+00 : f32
    %25 = vector.broadcast %cst_17 : f32 to vector<8x128xf32>
    %26 = arith.addf %25, %24 : vector<8x128xf32>
    %27 = arith.divf %25, %26 : vector<8x128xf32>
    %28 = vector.extract_strided_slice %15 {offsets = [0, 256], sizes = [8, 128], strides = [1, 1]} : vector<8x512xf32> to vector<8x128xf32>
    %29 = math.tanh %28 : vector<8x128xf32>
    %30 = vector.extract_strided_slice %15 {offsets = [0, 384], sizes = [8, 128], strides = [1, 1]} : vector<8x512xf32> to vector<8x128xf32>
    %31 = arith.negf %30 : vector<8x128xf32>
    %32 = math.exp %31 : vector<8x128xf32>
    %cst_18 = arith.constant 1.000000e+00 : f32
    %33 = vector.broadcast %cst_18 : f32 to vector<8x128xf32>
    %34 = arith.addf %33, %32 : vector<8x128xf32>
    %35 = arith.divf %33, %34 : vector<8x128xf32>
    %c0_19 = arith.constant 0 : index
    %c0_20 = arith.constant 0 : index
    %36 = vector.load %arg13[%c0_19, %c0_20] : memref<8x128xf32, #tpu.memory_space<vmem>>, vector<8x128xf32>
    %37 = arith.mulf %27, %36 : vector<8x128xf32>
    %38 = arith.mulf %21, %29 : vector<8x128xf32>
    %39 = arith.addf %37, %38 : vector<8x128xf32>
    %40 = math.tanh %39 : vector<8x128xf32>
    %41 = arith.mulf %35, %40 : vector<8x128xf32>
    %c0_21 = arith.constant 0 : index
    %c0_22 = arith.constant 0 : index
    %42 = vector.load %arg13[%c0_21, %c0_22] : memref<8x128xf32, #tpu.memory_space<vmem>>, vector<8x128xf32>
    tpu.vector_store %arg13[%c0_21, %c0_22], %39 {strides = array<i32>} : memref<8x128xf32, #tpu.memory_space<vmem>>, vector<8x128xf32>,
    %c0_23 = arith.constant 0 : index
    %c0_24 = arith.constant 0 : index
    %43 = vector.load %arg12[%c0_23, %c0_24] : memref<8x128xf32, #tpu.memory_space<vmem>>, vector<8x128xf32>
    tpu.vector_store %arg12[%c0_23, %c0_24], %41 {strides = array<i32>} : memref<8x128xf32, #tpu.memory_space<vmem>>, vector<8x128xf32>,
    %c0_25 = arith.constant 0 : index
    %c0_26 = arith.constant 0 : index
    %44 = vector.load %arg9[%c0_25, %c0_26] : memref<128x128xf32, #tpu.memory_space<vmem>>, vector<128x128xf32>
    %cst_27 = arith.constant dense<0.000000e+00> : vector<8x128xf32>
    %45 = tpu.matmul %41, %44, %cst_27 {dimension_numbers = #tpu.dot_dimension_numbers<[1], [0], [0], [1], [0, 0, 1, 1], [], []>} : vector<8x128xf32>, vector<128x128xf32>, vector<8x128xf32> -> vector<8x128xf32>
    %c0_28 = arith.constant 0 : index
    %c0_29 = arith.constant 0 : index
    %46 = vector.load %arg10[%c0_28, %c0_29] : memref<1x128xf32, #tpu.memory_space<vmem>>, vector<1x128xf32>
    %47 = vector.broadcast %46 : vector<1x128xf32> to vector<8x128xf32>
    %48 = arith.addf %45, %47 : vector<8x128xf32>
    %c0_30 = arith.constant 0 : index
    %c0_31 = arith.constant 0 : index
    %c0_32 = arith.constant 0 : index
    %49 = vector.load %arg11[%c0_30, %c0_31, %c0_32] : memref<1x8x128xf32, #tpu.memory_space<vmem>>, vector<1x8x128xf32>
    %50 = vector.shape_cast %49 : vector<1x8x128xf32> to vector<8x128xf32>
    %51 = vector.shape_cast %48 : vector<8x128xf32> to vector<1x8x128xf32>
    tpu.vector_store %arg11[%c0_30, %c0_31, %c0_32], %51 {strides = array<i32>} : memref<1x8x128xf32, #tpu.memory_space<vmem>>, vector<1x8x128xf32>,
    return
  }
  func.func @transform_0(%arg0: i32) -> (i32, i32) {
    %c0_i32 = arith.constant 0 : i32
    %c0_i32_0 = arith.constant 0 : i32
    %c0_i32_1 = arith.constant 0 : i32
    return %c0_i32, %c0_i32_0 : i32, i32
  }
  func.func @transform_1(%arg0: i32) -> (i32, i32) {
    %c0_i32 = arith.constant 0 : i32
    %c0_i32_0 = arith.constant 0 : i32
    %c0_i32_1 = arith.constant 0 : i32
    return %c0_i32, %c0_i32_0 : i32, i32
  }
  func.func @transform_2(%arg0: i32) -> (i32, i32) {
    %c0_i32 = arith.constant 0 : i32
    %c0_i32_0 = arith.constant 0 : i32
    %c0_i32_1 = arith.constant 0 : i32
    return %c0_i32, %c0_i32_0 : i32, i32
  }
  func.func @transform_3(%arg0: i32) -> (i32, i32, i32) {
    %c0_i32 = arith.constant 0 : i32
    %c0_i32_0 = arith.constant 0 : i32
    %c0_i32_1 = arith.constant 0 : i32
    return %arg0, %c0_i32, %c0_i32_0 : i32, i32, i32
  }
  func.func @transform_4(%arg0: i32) -> (i32, i32) {
    %c0_i32 = arith.constant 0 : i32
    %c0_i32_0 = arith.constant 0 : i32
    %c0_i32_1 = arith.constant 0 : i32
    return %c0_i32, %c0_i32_0 : i32, i32
  }
  func.func @transform_5(%arg0: i32) -> (i32, i32) {
    %c0_i32 = arith.constant 0 : i32
    %c0_i32_0 = arith.constant 0 : i32
    %c0_i32_1 = arith.constant 0 : i32
    return %c0_i32, %c0_i32_0 : i32, i32
  }
  func.func @transform_6(%arg0: i32) -> (i32, i32) {
    %c0_i32 = arith.constant 0 : i32
    %c0_i32_0 = arith.constant 0 : i32
    %c0_i32_1 = arith.constant 0 : i32
    return %c0_i32, %c0_i32_0 : i32, i32
  }
  func.func @transform_7(%arg0: i32) -> (i32, i32) {
    %c0_i32 = arith.constant 0 : i32
    %c0_i32_0 = arith.constant 0 : i32
    %c0_i32_1 = arith.constant 0 : i32
    return %c0_i32, %c0_i32_0 : i32, i32
  }
  func.func @transform_8(%arg0: i32) -> (i32, i32) {
    %c0_i32 = arith.constant 0 : i32
    %c0_i32_0 = arith.constant 0 : i32
    %c0_i32_1 = arith.constant 0 : i32
    return %c0_i32, %c0_i32_0 : i32, i32
  }
  func.func @transform_9(%arg0: i32) -> (i32, i32) {
    %c0_i32 = arith.constant 0 : i32
    %c0_i32_0 = arith.constant 0 : i32
    %c0_i32_1 = arith.constant 0 : i32
    return %c0_i32, %c0_i32_0 : i32, i32
  }
  func.func @transform_10(%arg0: i32) -> (i32, i32, i32) {
    %c0_i32 = arith.constant 0 : i32
    %c0_i32_0 = arith.constant 0 : i32
    %c0_i32_1 = arith.constant 0 : i32
    return %arg0, %c0_i32, %c0_i32_0 : i32, i32, i32
  }
  func.func @transform_11(%arg0: i32) -> (i32, i32) {
    %c0_i32 = arith.constant 0 : i32
    %c0_i32_0 = arith.constant 0 : i32
    %c0_i32_1 = arith.constant 0 : i32
    return %c0_i32, %c0_i32_0 : i32, i32
  }
  func.func @transform_12(%arg0: i32) -> (i32, i32) {
    %c0_i32 = arith.constant 0 : i32
    %c0_i32_0 = arith.constant 0 : i32
    %c0_i32_1 = arith.constant 0 : i32
    return %c0_i32, %c0_i32_0 : i32, i32
  }
}

</mosaic_0001>

<bundles_post_ra>
// kernel: tpu_custom_call.1
= control target key start
LH: loop header
LB: loop body
LE: loop exit
PB: predicated region body
PF: predicated region fallthrough
CT: control target
= control target key end

     0   :  { %s1967_s0 = inlined_call_operand.hbm [shape: f32[8,128], index: 0, kind: input, shape index: {}]   ;;  %s1968_s1 = inlined_call_operand.vmem [shape: f32[1,128], index: 1, kind: input, shape index: {}]   ;;  %s1969_s2 = inlined_call_operand.vmem [shape: f32[1,128], index: 2, kind: input, shape index: {}]   ;;  %s1970_s3 = inlined_call_operand.hbm [shape: f32[8,8,128], index: 3, kind: input, shape index: {}]   ;;  %s1971_s4 = inlined_call_operand.hbm [shape: f32[256,512], index: 4, kind: input, shape index: {}]   ;;  %s1972_s5 = inlined_call_operand.hbm [shape: f32[1,512], index: 5, kind: input, shape index: {}]   ;;  %s1973_s6 = inlined_call_operand.vmem [shape: f32[8,128], index: 6, kind: input, shape index: {}]   ;;  %s1974_s7 = inlined_call_operand.hbm [shape: f32[8,128], index: 7, kind: input, shape index: {}]   ;;  %s1975_s8 = inlined_call_operand.hbm [shape: f32[128,128], index: 8, kind: input, shape index: {}]   ;;  %s1976_s9 = inlined_call_operand.vmem [shape: f32[1,128], index: 9, kind: input, shape index: {}]   ;;  %s1977_s10 = inlined_call_operand.hbm [shape: f32[8,8,128], index: 10, kind: output, shape index: {0}]   ;;  %s1978_s11 = inlined_call_operand.hbm [shape: f32[8,128], index: 11, kind: output, shape index: {1}]   ;;  %s1979_s12 = inlined_call_operand.hbm [shape: f32[8,128], index: 12, kind: output, shape index: {2}]  }
   0x1   :  { %1986 = sst [smem:[#allocation28_spill]] %s1967_s0 }
   0x2   :  { %1987 = sst [smem:[#allocation29_spill]] %s1971_s4 }
   0x3   :  { %1988 = sst [smem:[#allocation30_spill]] %s1972_s5 }
   0x4   :  { %1989 = sst [smem:[#allocation31_spill]] %s1974_s7 }
   0x5   :  { %1990 = sst [smem:[#allocation32_spill]] %s1975_s8 }
   0x6   :  { %18 = vsyncpa [#allocation5], 0 }
   0x7   :  { %19 = vsyncpa [#allocation8], 0 }
   0x8   :  { %21 = vsyncpa [#allocation8 + $0x1], 0 }
   0x9   :  { %22 = vsyncpa [#allocation11], 0 }
   0xa   :  { %23 = vsyncpa [#allocation14], 0 }
   0xb   :  { %24 = vsyncpa [#allocation6], 0 }
   0xc   :  { %26 = vsyncpa [#allocation6 + $0x1], 0 }
   0xd   :  { %27 = vsyncpa [#allocation17], 0  ;;  %s1712_s21 = smov 0   ;;  %s1714_s22 = smov 0  }
   0xe   :  { %s1716_s23 = smov 0   ;;  %s1718_s24 = smov 0  }
   0xf LB: > { %1991 = sst [smem:[#allocation26_spill]] %s1626_s23  ;;  %s1632_s25 = smov [#allocation9]   ;;  %s1630_s24 = sphi %s1718_s24, %s2029_s24   ;;  %s1626_s23 = sphi %s1716_s23, %s2026_s23   ;;  %s1622_s22 = sphi %s1714_s22, %s2028_s22   ;;  %s1618_s21 = sphi %s1712_s21, %s2027_s21  }
  0x10   : > { %s350_s26 = sshll.u32 %s1632_s25, 4  ;;  %s1733_s27 = sadd.s32 4294967295, %s1630_s24   ;;  %s351_s26 = int_to_ptr.vmem [resolvable:$true] %s350_s26 }
  0x11   : > { %p1121_p0 = scmp.ge.s32.totalorder %s1630_s24, 1  ;;  %p1980_p1 = scmp.eq.s32.totalorder %s1733_s27, 0 }
  0x12   : > { %p321_p2 = scmp.lt.s32.totalorder %s1630_s24, 9  ;;  %s1633_s29 = smov [#allocation10]  }
  0x13   : > { %s364_s30 = sshll.u32 %s1633_s29, 4  ;;  %s1634_s14 = smov [#allocation4]   ;;  %s365_s30 = int_to_ptr.vmem [resolvable:$true] %s364_s30 }
  0x14   : > { %p1739_p4 = pnand %p1121_p0, %p321_p2  ;;  %s334_s15 = sshll.u32 %s1634_s14, 4  ;;  %s1751_s15 = int_to_ptr.vmem [resolvable:$true] %s334_s15 }
  0x15   : > { %s1351_s17 = scalar_lea.vmem %s351_s26, 16384  ;;  %p1359_p11 = scmp.lt.s32.totalorder %s351_s26, %s351_s26 }
  0x16   : > { %s1992_s28 = scalar_select %p1739_p4, 1, 0 }
  0x17   : > { %p1237_p5 = pneg %p1739_p4  ;;  %p1352_p8 = scmp.ne.s32.totalorder %s351_s26, %s1351_s17 }
  0x18   : > { %p1360_p12 = scmp.lt.s32.totalorder %s1351_s17, %s1351_s17 }
  0x19   : > { %p1747_p6 = pnand %p1237_p5, %p1980_p1 }
  0x1a   : > { %p1361_p13 = por %p1360_p12, %p1359_p11 }
  0x1b   : > { %p1755_p7 = pneg %p1747_p6 }
  0x1d   : > { %p1354_p9 = pnand %p1352_p8, %p1755_p7 }
  0x1f   : > { %p1355_p10 = pneg %p1354_p9 }
  0x21   : > { %p1362_p0 = pnand %p1361_p13, %p1355_p10 }
  0x23   : > { %1365 = shalt.err (!%p1362_p0)
}
  0x24   : > { %s1635_s18 = smov 512   ;;  %s1636_s19 = smov 32  }
  0x25   : > { %s1995_s4 = sld [smem:[#allocation29_spill]]  ;;  %s1377_s29 = scalar_lea.vmem %s365_s30, 64 }
  0x26   : > { %p1378_p2 = scmp.ne.s32.totalorder %s365_s30, %s1377_s29  ;;  %p1385_p9 = scmp.lt.s32.totalorder %s365_s30, %s365_s30 }
  0x27   : > { %p1386_p3 = scmp.lt.s32.totalorder %s1377_s29, %s1377_s29 }
  0x28   : > { %p1380_p5 = pnand %p1378_p2, %p1755_p7 }
  0x29   : > { %p1387_p1 = por %p1386_p3, %p1385_p9 }
  0x2a   : > { %p1381_p8 = pneg %p1380_p5 }
  0x2b   : > { %1243 = dma.hbm_to_vmem [thread:$0]  (!%p1747_p6), %s1995_s4, 16384, %s351_s26, [#allocation8], %s1635_s18, %s1635_s18, %s1636_s19  }
  0x2c   : > { %p1388_p11 = pnand %p1387_p1, %p1381_p8 }
  0x2e   : > { %1391 = shalt.err (!%p1388_p11)
}
  0x2f   : > { %s1996_s5 = sld [smem:[#allocation30_spill]]  ;;  %s1403_s26 = scalar_lea.vmem %s1751_s15, 128 }
  0x30   : > { %p1404_p10 = scmp.ne.s32.totalorder %s1751_s15, %s1403_s26  ;;  %p1411_p0 = scmp.lt.s32.totalorder %s1751_s15, %s1751_s15 }
  0x31   : > { %p1412_p3 = scmp.lt.s32.totalorder %s1403_s26, %s1403_s26 }
  0x32   : > { %p1406_p12 = pnand %p1404_p10, %p1755_p7 }
  0x33   : > { %p1413_p1 = por %p1412_p3, %p1411_p0 }
  0x34   : > { %p1407_p13 = pneg %p1406_p12 }
  0x35   : > { %1246 = dma.hbm_to_vmem [thread:$0]  (!%p1747_p6), %s1996_s5, 64, %s365_s30, [#allocation11]  }
  0x36   : > { %p1414_p2 = pnand %p1413_p1, %p1407_p13 }
  0x38   : > { %1417 = shalt.err (!%p1414_p2)
}
  0x39   : > { %s1997_s0 = sld [smem:[#allocation28_spill]]  ;;  %s1637_s30 = smov [#allocation12]  }
  0x3a   : > { %s378_s20 = sshll.u32 %s1637_s30, 4  ;;  %s1638_s25 = smov [#allocation13]   ;;  %s379_s20 = int_to_ptr.vmem [resolvable:$true] %s378_s20 }
  0x3b   : > { %s388_s29 = sshll.u32 %s1638_s25, 4  ;;  %s1429_s14 = scalar_lea.vmem %s379_s20, 128  ;;  %s389_s29 = int_to_ptr.vmem [resolvable:$true] %s388_s29 }
  0x3c   : > { %p1430_p5 = scmp.ne.s32.totalorder %s379_s20, %s1429_s14  ;;  %p1437_p11 = scmp.lt.s32.totalorder %s379_s20, %s379_s20 }
  0x3d   : > { %p1438_p10 = scmp.lt.s32.totalorder %s1429_s14, %s1429_s14 }
  0x3e   : > { %p1432_p8 = pnand %p1430_p5, %p1755_p7 }
  0x3f   : > { %1240 = dma.hbm_to_vmem [thread:$0]  (!%p1747_p6), %s1997_s0, 128, %s1751_s15, [#allocation5]  }
  0x40   : > { %p1433_p9 = pneg %p1432_p8  ;;  %p1439_p12 = por %p1438_p10, %p1437_p11 }
  0x42   : > { %p1440_p13 = pnand %p1439_p12, %p1433_p9 }
  0x44   : > { %1443 = shalt.err (!%p1440_p13)
}
  0x45   : > { %s1998_s7 = sld [smem:[#allocation31_spill]]  ;;  %s1455_s15 = scalar_lea.vmem %s389_s29, 2048 }
  0x46   : > { %p1456_p0 = scmp.ne.s32.totalorder %s389_s29, %s1455_s15  ;;  %p1463_p2 = scmp.lt.s32.totalorder %s389_s29, %s389_s29 }
  0x47   : > { %p1464_p5 = scmp.lt.s32.totalorder %s1455_s15, %s1455_s15 }
  0x48   : > { %p1458_p3 = pnand %p1456_p0, %p1755_p7 }
  0x49   : > { %p1465_p8 = por %p1464_p5, %p1463_p2 }
  0x4a   : > { %p1459_p1 = pneg %p1458_p3 }
  0x4b   : > { %1249 = dma.hbm_to_vmem [thread:$0]  (!%p1747_p6), %s1998_s7, 128, %s379_s20, [#allocation11]  }
  0x4c   : > { %p1466_p4 = pnand %p1465_p8, %p1459_p1 }
  0x4e   : > { %1469 = shalt.err (!%p1466_p4)
}
  0x4f   : > { %s1639_s18 = smov 128   ;;  %s1640_s16 = smov 8  }
  0x50   : > { %s1999_s8 = sld [smem:[#allocation32_spill]]  ;;  %s1120_s20 = sadd.s32 4294967294, %s1630_s24  }
  0x51   : > { %s1801_s25 = sadd.s32 1, %s1630_s24   ;;  %s103_s14 = sadd.s32 1, %s1626_s23 }
  0x52   : > { %s100_s17 = ssub.s32 %s1630_s24, %s1801_s25  ;;  %p110_p4 = scmp.ne.s32.totalorder %s1626_s23, %s1622_s22 }
  0x53   : > { %p101_p7 = scmp.eq.s32.totalorder %s100_s17, 0  ;;  %p111_p9 = scmp.eq.s32.totalorder %s1630_s24, 0 }
  0x54   : > { %p116_p11 = scmp.ne.s32.totalorder %s1622_s22, %s1618_s21  ;;  %p1982_p10 = scmp.eq.s32.totalorder %s1733_s27, 7 }
  0x55   : > { %s1813_s13 = scalar_select %p101_p7, %s1626_s23, %s103_s14  }
  0x56   : > { %1252 = dma.hbm_to_vmem [thread:$0]  (!%p1747_p6), %s1999_s8, 2048, %s389_s29, [#allocation14], %s1639_s18, %s1639_s18, %s1640_s16  }
  0x57   : > { %2000 = sst [smem:[#allocation27_spill]] %s1813_s13  ;;  %p112_p12 = por %p111_p9, %p110_p4 }
  0x58   : > { %p2001_p13 = scmp.eq.s32.totalorder %s1733_s27, 0  ;;  %p1823_p6 = por %p1982_p10, %p110_p4 }
  0x59   : > { %p272_p3 = scmp.eq.s32.totalorder %s1120_s20, 7  ;;  %p1266_p1 = scmp.lt.s32.totalorder %s1630_s24, 8 }
  0x5a   : > { %p1817_p0 = por %p2001_p13, %p116_p11  ;;  %s405_s15 = sand.u32 1, %s1630_s24  }
  0x5b   : > { %s2003_s26 = scalar_select %p1823_p6, 1, 0 }
  0x5c   : > { %s2002_s29 = scalar_select %p1817_p0, 1, 0 }
  0x5d   : > { %p1829_p2 = por %p272_p3, %p116_p11  ;;  %s407_s16 = sand.u32 1, %s1626_s23  }
  0x5e   : > { %s1129_s19 = sshll.u32 %s1630_s24, 7  ;;  %s1128_s30 = sshll.u32 %s407_s16, 3 }
  0x5f   : > { %s2004_s18 = scalar_select %p1829_p2, 1, 0 }
  0x60   : > { %s1838_s0 = scalar_lea.hbm %s1970_s3, %s1129_s19  ;;  %p1840_p5 = pnand %p1266_p1, %p112_p12 }
  0x61   : > { %s409_s20 = scalar_lea.vmem [#allocation7], %s1128_s30  ;;  %s406_s7 = scalar_lea.sflag [#allocation8], %s405_s15 }
  0x62   : > { %s416_s5 = sshll.u32 %s409_s20, 4  ;;  %s1470_s8 = scalar_lea.hbm %s1838_s0, 128  ;;  %s417_s5 = int_to_ptr.vmem [resolvable:$true] %s416_s5 }
  0x63   : > { %p1471_p8 = scmp.ne.s32.totalorder %s1838_s0, %s1470_s8  ;;  %p1472_p4 = pneg %p1840_p5 }
  0x64   : > { %s1475_s14 = scalar_lea.hbm %s1970_s3, 1024  ;;  %p1476_p11 = scmp.lt.s32.totalorder %s1838_s0, %s1970_s3 }
  0x65   : > { %p1473_p7 = pnand %p1472_p4, %p1471_p8  ;;  %p1477_p12 = scmp.lt.s32.totalorder %s1475_s14, %s1470_s8 }
  0x67   : > { %p1474_p9 = pneg %p1473_p7  ;;  %p1478_p13 = por %p1477_p12, %p1476_p11 }
  0x69   : > { %p1479_p3 = pnand %p1478_p13, %p1474_p9 }
  0x6b   : > { %1482 = shalt.err (!%p1479_p3)
}
  0x6c   : > { %s1483_s30 = scalar_lea.vmem %s417_s5, 128  ;;  %s1641_s15 = smov [#allocation7]  }
  0x6d   : > { %p1484_p1 = scmp.ne.s32.totalorder %s417_s5, %s1483_s30  ;;  %s1488_s20 = sshll.u32 %s1641_s15, 4  ;;  %s1489_s20 = int_to_ptr.vmem [resolvable:$false] %s1488_s20 }
  0x6e   : > { %s1490_s23 = scalar_lea.vmem %s1489_s20, 256  ;;  %p1491_p8 = scmp.lt.s32.totalorder %s417_s5, %s1489_s20 }
  0x6f   : > { %p1486_p10 = pnand %p1484_p1, %p1472_p4  ;;  %p1492_p7 = scmp.lt.s32.totalorder %s1490_s23, %s1483_s30 }
  0x71   : > { %p1487_p2 = pneg %p1486_p10  ;;  %p1493_p6 = por %p1492_p7, %p1491_p8 }
  0x73   : > { %p1494_p0 = pnand %p1493_p6, %p1487_p2 }
  0x75   : > { %1497 = shalt.err (!%p1494_p0)
}
  0x76   : > { %1256 = dma.hbm_to_vmem [thread:$0]  (!%p1840_p5), %s1838_s0, 128, %s417_s5, %s406_s7  }
  0x77   : > { %p2006_p9 = scmp.ne.s32.totalorder %s1992_s28, 0 }
  0x78   : > { %p2007_p11 = scmp.eq.s32.totalorder (!%p2006_p9), %s1733_s27, 0 }
  0x79   : > { %425 = sbr.rel (%p2006_p9) target bundleno = 702 (0x2be), region = 60 }
  0x7e   : > { %1589 = dma.done.wait (%p2007_p11), [#allocation5], 128   ;;  %p2008_p10 = pmov %p2007_p11 }
  0x7f   : > { %s431_s8 = sand.u32 1, %s1733_s27   ;;  %s433_s23 = sand.u32 1, %s1622_s22  }
  0x80   : > { %1591 = vsyncadd (%p2008_p10), [#allocation5], 4294967168  ;;  %s1868_s13 = sshll.u32 %s433_s23, 3  ;;  %s432_s0 = scalar_lea.sflag [#allocation8], %s431_s8 }
  0x81   : > { %s435_s4 = scalar_lea.vmem [#allocation7], %s1868_s13  ;;  %p2009_p0 = scmp.ne.s32.totalorder %s2002_s29, 0 }
  0x83   : > { %1593 = dma.done.wait (%p2009_p0), %s432_s0, 128  }
  0x84   : > { %1595 = vsyncadd (%p2009_p0), %s432_s0, 4294967168  ;;  %p2010_p6 = pmov %p2008_p10 }
  0x86   : > { %1597 = dma.done.wait (%p2010_p6), [#allocation8], 16384   ;;  %p2011_p2 = pmov %p2010_p6 }
  0x88   : > { %1599 = vsyncadd (%p2011_p2), [#allocation8], 4294950912  ;;  %p2012_p5 = pmov %p2011_p2 }
  0x89   : > { %p2013_p4 = pmov %p2011_p2 }
  0x8a   : > { %1601 = dma.done.wait (%p2012_p5), [#allocation11], 192  }
  0x8b   : > { %1603 = vsyncadd (%p2013_p4), [#allocation11], 4294967104  ;;  %p2014_p12 = pmov %p2011_p2 }
  0x8c   : > { %p2015_p13 = pmov %p2011_p2 }
  0x8d   : > { %1605 = dma.done.wait (%p2014_p12), [#allocation14], 2048  }
  0x8e   : > { %1607 = vsyncadd (%p2015_p13), [#allocation14], 4294965248  ;;  %s487_s5 = scalar_lea.vmem [#allocation15], %s1868_s13  ;;  %p2016_p3 = scmp.ne.s32.totalorder %s1733_s27, 0 }
  0x90   : > { %495 = sbr.rel (%p2016_p3) target bundleno = 175 (0xaf), region = 88 }
  0x95   : > { %v496_v0 = vld [vmem:[#allocation4] sm:$0xff]  ;;  %v1139_v1 = vld [vmem:[%s1968_s1] ss:$0 sm:$0xff] }
  0x96   : > { %v1140_v2 = vld [vmem:[%s1969_s2] ss:$0 sm:$0xff]  ;;  %v504_v3 = vmul.f32 %v1139_v1, %v496_v0  ;;  %v520_v5 = vld [vmem:[#allocation12] sm:$0xff] }
  0x97   : > { %v518_v4 = vld [vmem:[%s1973_s6] sm:$0xff]  ;;  %521 = vst [vmem:[#allocation18] sm:$0xff] %v520_v5 }
  0x98   : > { %519 = vst [vmem:[#allocation16] sm:$0xff] %v518_v4  ;;  %v512_v6 = vadd.f32 %v1140_v2, %v504_v3 }
  0x9a   : > { %v513_v7 = vmax.f32 %v512_v6, 0.0 }
  0x9c   : > { %v514_v8 = vsub.f32 0.0, %v513_v7 }
  0x9e   : > { %v515_v9 = vmul.f32 1.442695, %v514_v8 }
  0xa0   : > { %1322 = vpow2.f32 %v515_v9 }
  0xad   : > { %v1323_v10 = vpop.eup %1322 }
  0xae   : > { %517 = vst [vmem:[#allocation2] sm:$0xff] %v1323_v10 }
  0xaf PF: > { %v591_v11 = vld [vmem:[#allocation9 + $0x1e8] sm:$0xff]  ;;  %v590_v12 = vld [vmem:[#allocation9 + $0x1e0] sm:$0xff]  ;;  %v593_v19 = vld [vmem:[#allocation9 + $0x1f8] sm:$0xff]  ;;  %vm1643_vm0 = vmmov 0   ;;  %s1644_s17 = smov [#allocation16]   ;;  %p2017_p8 = scmp.eq.s32.totalorder %s1733_s27, 7 }
  0xb0   : > { %v587_v13 = vld [vmem:[#allocation9 + $0x1c8] sm:$0xff]  ;;  %680 = vmatprep.subr.mxu0 %v591_v11  ;;  %v586_v14 = vld [vmem:[#allocation9 + $0x1c0] sm:$0xff]  ;;  %751 = vmatprep.subr.mxu1 %v593_v19  ;;  %v592_v21 = vld [vmem:[#allocation9 + $0x1f0] sm:$0xff]  ;;  %s968_s30 = sshll.u32 %s1644_s17, 4  ;;  %s969_s30 = int_to_ptr.vmem [resolvable:$true] %s968_s30 }
  0xb1   : > { %681 = vmatpush1.msra.mxu0 %v590_v12  ;;  %v583_v15 = vld [vmem:[#allocation9 + $0x1a8] sm:$0xff]  ;;  %v582_v16 = vld [vmem:[#allocation9 + $0x1a0] sm:$0xff]  ;;  %752 = vmatpush1.msra.mxu1 %v592_v21  ;;  %v589_v23 = vld [vmem:[#allocation9 + $0x1d8] sm:$0xff]  ;;  %s1498_s15 = scalar_lea.vmem %s969_s30, 128  ;;  %p1505_p11 = scmp.lt.s32.totalorder %s969_s30, %s969_s30 }
  0xb2   : > { %682 = vmatprep.subr.mxu0 %v587_v13  ;;  %v579_v17 = vld [vmem:[#allocation9 + $0x188] sm:$0xff]  ;;  %v578_v18 = vld [vmem:[#allocation9 + $0x180] sm:$0xff]  ;;  %v588_v24 = vld [vmem:[#allocation9 + $0x1d0] sm:$0xff]  ;;  %753 = vmatprep.subr.mxu1 %v589_v23  ;;  %p1499_p1 = scmp.ne.s32.totalorder %s969_s30, %s1498_s15  ;;  %p1506_p10 = scmp.lt.s32.totalorder %s1498_s15, %s1498_s15 }
  0xb3   : > { %683 = vmatpush1.msra.mxu0 %v586_v14  ;;  %v575_v20 = vld [vmem:[#allocation9 + $0x168] sm:$0xff]  ;;  %v574_v22 = vld [vmem:[#allocation9 + $0x160] sm:$0xff]  ;;  %v585_v26 = vld [vmem:[#allocation9 + $0x1b8] sm:$0xff]  ;;  %754 = vmatpush1.msra.mxu1 %v588_v24 }
  0xb4   : > { %684 = vmatprep.subr.mxu0 %v583_v15  ;;  %v571_v25 = vld [vmem:[#allocation9 + $0x148] sm:$0xff]  ;;  %v570_v27 = vld [vmem:[#allocation9 + $0x140] sm:$0xff]  ;;  %v584_v28 = vld [vmem:[#allocation9 + $0x1b0] sm:$0xff]  ;;  %755 = vmatprep.subr.mxu1 %v585_v26  ;;  %p1500_p7 = pnand %p1499_p1, %p2017_p8  ;;  %p1507_p0 = por %p1506_p10, %p1505_p11 }
  0xb5   : > { %685 = vmatpush1.msra.mxu0 %v582_v16  ;;  %v581_v29 = vld [vmem:[#allocation9 + $0x198] sm:$0xff]  ;;  %v567_v30 = vld [vmem:[#allocation9 + $0x128] sm:$0xff]  ;;  %v580_v31 = vld [vmem:[#allocation9 + $0x190] sm:$0xff]  ;;  %756 = vmatpush1.msra.mxu1 %v584_v28 }
  0xb6   : > { %686 = vmatprep.subr.mxu0 %v579_v17  ;;  %v566_v32 = vld [vmem:[#allocation9 + $0x120] sm:$0xff]  ;;  %v577_v33 = vld [vmem:[#allocation9 + $0x178] sm:$0xff]  ;;  %v563_v34 = vld [vmem:[#allocation9 + $0x108] sm:$0xff]  ;;  %757 = vmatprep.subr.mxu1 %v581_v29  ;;  %p1501_p9 = pneg %p1500_p7 }
  0xb7   : > { %687 = vmatpush1.msra.mxu0 %v578_v18  ;;  %v576_v35 = vld [vmem:[#allocation9 + $0x170] sm:$0xff]  ;;  %v562_v36 = vld [vmem:[#allocation9 + $0x100] sm:$0xff]  ;;  %758 = vmatpush1.msra.mxu1 %v580_v31  ;;  %v573_v37 = vld [vmem:[#allocation9 + $0x158] sm:$0xff] }
  0xb8   : > { %688 = vmatprep.subr.mxu0 %v575_v20  ;;  %v559_v38 = vld [vmem:[#allocation9 + $0xe8] sm:$0xff]  ;;  %759 = vmatprep.subr.mxu1 %v577_v33  ;;  %v572_v39 = vld [vmem:[#allocation9 + $0x150] sm:$0xff]  ;;  %v558_v40 = vld [vmem:[#allocation9 + $0xe0] sm:$0xff]  ;;  %p1508_p6 = pnand %p1507_p0, %p1501_p9 }
  0xb9   : > { %689 = vmatpush1.msra.mxu0 %v574_v22  ;;  %760 = vmatpush1.msra.mxu1 %v576_v35  ;;  %v569_v41 = vld [vmem:[#allocation9 + $0x138] sm:$0xff]  ;;  %v555_v42 = vld [vmem:[#allocation9 + $0xc8] sm:$0xff]  ;;  %v568_v43 = vld [vmem:[#allocation9 + $0x130] sm:$0xff] }
  0xba   : > { %690 = vmatprep.subr.mxu0 %v571_v25  ;;  %761 = vmatprep.subr.mxu1 %v573_v37  ;;  %v554_v44 = vld [vmem:[#allocation9 + $0xc0] sm:$0xff]  ;;  %v565_v45 = vld [vmem:[#allocation9 + $0x118] sm:$0xff]  ;;  %v551_v46 = vld [vmem:[#allocation9 + $0xa8] sm:$0xff] }
  0xbb   : > { %691 = vmatpush1.msra.mxu0 %v570_v27  ;;  %762 = vmatpush1.msra.mxu1 %v572_v39  ;;  %v564_v47 = vld [vmem:[#allocation9 + $0x110] sm:$0xff]  ;;  %v550_v48 = vld [vmem:[#allocation9 + $0xa0] sm:$0xff]  ;;  %v561_v49 = vld [vmem:[#allocation9 + $0xf8] sm:$0xff] }
  0xbc   : > { %692 = vmatprep.subr.mxu0 %v567_v30  ;;  %763 = vmatprep.subr.mxu1 %v569_v41  ;;  %v547_v50 = vld [vmem:[#allocation9 + $0x88] sm:$0xff]  ;;  %v560_v51 = vld [vmem:[#allocation9 + $0xf0] sm:$0xff]  ;;  %v546_v52 = vld [vmem:[#allocation9 + $0x80] sm:$0xff] }
  0xbd   : > { %693 = vmatpush1.msra.mxu0 %v566_v32  ;;  %764 = vmatpush1.msra.mxu1 %v568_v43  ;;  %v557_v53 = vld [vmem:[#allocation9 + $0xd8] sm:$0xff]  ;;  %v543_v54 = vld [vmem:[#allocation9 + $0x68] sm:$0xff]  ;;  %v556_v55 = vld [vmem:[#allocation9 + $0xd0] sm:$0xff] }
  0xbe   : > { %694 = vmatprep.subr.mxu0 %v563_v34  ;;  %765 = vmatprep.subr.mxu1 %v565_v45  ;;  %v542_v56 = vld [vmem:[#allocation9 + $0x60] sm:$0xff]  ;;  %v553_v57 = vld [vmem:[#allocation9 + $0xb8] sm:$0xff]  ;;  %v539_v58 = vld [vmem:[#allocation9 + $0x48] sm:$0xff] }
  0xbf   : > { %695 = vmatpush1.msra.mxu0 %v562_v36  ;;  %766 = vmatpush1.msra.mxu1 %v564_v47  ;;  %v552_v59 = vld [vmem:[#allocation9 + $0xb0] sm:$0xff]  ;;  %v538_v60 = vld [vmem:[#allocation9 + $0x40] sm:$0xff]  ;;  %v549_v61 = vld [vmem:[#allocation9 + $0x98] sm:$0xff] }
  0xc0   : > { %696 = vmatprep.subr.mxu0 %v559_v38  ;;  %767 = vmatprep.subr.mxu1 %v561_v49  ;;  %v535_v62 = vld [vmem:[#allocation9 + $0x28] sm:$0xff]  ;;  %v548_v63 = vld [vmem:[#allocation9 + $0x90] sm:$0xff]  ;;  %v534_v0 = vld [vmem:[#allocation9 + $0x20] sm:$0xff] }
  0xc1   : > { %697 = vmatpush1.msra.mxu0 %v558_v40  ;;  %768 = vmatpush1.msra.mxu1 %v560_v51  ;;  %v545_v1 = vld [vmem:[#allocation9 + $0x78] sm:$0xff]  ;;  %v531_v2 = vld [vmem:[#allocation9 + $0x8] sm:$0xff]  ;;  %v544_v3 = vld [vmem:[#allocation9 + $0x70] sm:$0xff] }
  0xc2   : > { %698 = vmatprep.subr.mxu0 %v555_v42  ;;  %769 = vmatprep.subr.mxu1 %v557_v53  ;;  %v530_v4 = vld [vmem:[#allocation9] sm:$0xff]  ;;  %v541_v5 = vld [vmem:[#allocation9 + $0x58] sm:$0xff]  ;;  %v655_v6 = vld [vmem:[#allocation9 + $0x3e8] sm:$0xff] }
  0xc3   : > { %699 = vmatpush1.msra.mxu0 %v554_v44  ;;  %770 = vmatpush1.msra.mxu1 %v556_v55  ;;  %v540_v7 = vld [vmem:[#allocation9 + $0x50] sm:$0xff]  ;;  %v654_v8 = vld [vmem:[#allocation9 + $0x3e0] sm:$0xff]  ;;  %v537_v9 = vld [vmem:[#allocation9 + $0x38] sm:$0xff] }
  0xc4   : > { %700 = vmatprep.subr.mxu0 %v551_v46  ;;  %771 = vmatprep.subr.mxu1 %v553_v57  ;;  %v651_v10 = vld [vmem:[#allocation9 + $0x3c8] sm:$0xff]  ;;  %v536_v11 = vld [vmem:[#allocation9 + $0x30] sm:$0xff]  ;;  %v650_v12 = vld [vmem:[#allocation9 + $0x3c0] sm:$0xff] }
  0xc5   : > { %701 = vmatpush1.msra.mxu0 %v550_v48  ;;  %772 = vmatpush1.msra.mxu1 %v552_v59  ;;  %v533_v13 = vld [vmem:[#allocation9 + $0x18] sm:$0xff]  ;;  %v647_v14 = vld [vmem:[#allocation9 + $0x3a8] sm:$0xff]  ;;  %v532_v15 = vld [vmem:[#allocation9 + $0x10] sm:$0xff] }
  0xc6   : > { %702 = vmatprep.subr.mxu0 %v547_v50  ;;  %773 = vmatprep.subr.mxu1 %v549_v61  ;;  %v646_v16 = vld [vmem:[#allocation9 + $0x3a0] sm:$0xff]  ;;  %v657_v17 = vld [vmem:[#allocation9 + $0x3f8] sm:$0xff]  ;;  %v643_v18 = vld [vmem:[#allocation9 + $0x388] sm:$0xff] }
  0xc7   : > { %703 = vmatpush1.msra.mxu0 %v546_v52  ;;  %774 = vmatpush1.msra.mxu1 %v548_v63  ;;  %v656_v19 = vld [vmem:[#allocation9 + $0x3f0] sm:$0xff]  ;;  %v642_v20 = vld [vmem:[#allocation9 + $0x380] sm:$0xff]  ;;  %v653_v21 = vld [vmem:[#allocation9 + $0x3d8] sm:$0xff] }
  0xc8   : > { %704 = vmatprep.subr.mxu0 %v543_v54  ;;  %775 = vmatprep.subr.mxu1 %v545_v1  ;;  %v639_v22 = vld [vmem:[#allocation9 + $0x368] sm:$0xff]  ;;  %v652_v23 = vld [vmem:[#allocation9 + $0x3d0] sm:$0xff]  ;;  %v638_v24 = vld [vmem:[#allocation9 + $0x360] sm:$0xff] }
  0xc9   : > { %705 = vmatpush1.msra.mxu0 %v542_v56  ;;  %776 = vmatpush1.msra.mxu1 %v544_v3  ;;  %v649_v25 = vld [vmem:[#allocation9 + $0x3b8] sm:$0xff]  ;;  %v635_v26 = vld [vmem:[#allocation9 + $0x348] sm:$0xff]  ;;  %v648_v27 = vld [vmem:[#allocation9 + $0x3b0] sm:$0xff] }
  0xca   : > { %706 = vmatprep.subr.mxu0 %v539_v58  ;;  %777 = vmatprep.subr.mxu1 %v541_v5  ;;  %v634_v28 = vld [vmem:[#allocation9 + $0x340] sm:$0xff]  ;;  %v645_v29 = vld [vmem:[#allocation9 + $0x398] sm:$0xff]  ;;  %v631_v30 = vld [vmem:[#allocation9 + $0x328] sm:$0xff] }
  0xcb   : > { %707 = vmatpush1.msra.mxu0 %v538_v60  ;;  %778 = vmatpush1.msra.mxu1 %v540_v7  ;;  %v644_v31 = vld [vmem:[#allocation9 + $0x390] sm:$0xff]  ;;  %v630_v32 = vld [vmem:[#allocation9 + $0x320] sm:$0xff]  ;;  %v641_v33 = vld [vmem:[#allocation9 + $0x378] sm:$0xff] }
  0xcc   : > { %708 = vmatprep.subr.mxu0 %v535_v62  ;;  %779 = vmatprep.subr.mxu1 %v537_v9  ;;  %v627_v34 = vld [vmem:[#allocation9 + $0x308] sm:$0xff]  ;;  %v640_v35 = vld [vmem:[#allocation9 + $0x370] sm:$0xff]  ;;  %v626_v36 = vld [vmem:[#allocation9 + $0x300] sm:$0xff] }
  0xcd   : > { %709 = vmatpush1.msra.mxu0 %v534_v0  ;;  %780 = vmatpush1.msra.mxu1 %v536_v11  ;;  %v623_v37 = vld [vmem:[#allocation9 + $0x2e8] sm:$0xff]  ;;  %v637_v38 = vld [vmem:[#allocation9 + $0x358] sm:$0xff]  ;;  %v636_v39 = vld [vmem:[#allocation9 + $0x350] sm:$0xff] }
  0xce   : > { %710 = vmatprep.subr.mxu0 %v531_v2  ;;  %781 = vmatprep.subr.mxu1 %v533_v13  ;;  %v524_v40 = vld [vmem:[#allocation2] sm:$0xff]  ;;  %v633_v43 = vld [vmem:[#allocation9 + $0x338] sm:$0xff]  ;;  %v619_v44 = vld [vmem:[#allocation9 + $0x2c8] sm:$0xff] }
  0xcf   : > { %711 = vmatpush1.msra.mxu0 %v530_v4  ;;  %782 = vmatpush1.msra.mxu1 %v532_v15  ;;  %v525_v41 = vld [vmem:[#allocation16] sm:$0xff]  ;;  %v632_v45 = vld [vmem:[#allocation9 + $0x330] sm:$0xff]  ;;  %v615_v49 = vld [vmem:[#allocation9 + $0x2a8] sm:$0xff]  ;;  %v1642_v15 = vmov 0.0  }
  0xd0   : > { %712 = vmatprep.subr.mxu0 %v655_v6  ;;  %783 = vmatprep.subr.mxu1 %v657_v17  ;;  %v622_v42 = vld [vmem:[#allocation9 + $0x2e0] sm:$0xff]  ;;  %v629_v47 = vld [vmem:[#allocation9 + $0x318] sm:$0xff]  ;;  %v526_v48 = vmul.f32 %v525_v41, %v524_v40  ;;  %v628_v51 = vld [vmem:[#allocation9 + $0x310] sm:$0xff] }
  0xd1   : > { %713 = vmatpush2.msra.mxu0 %v654_v8  ;;  %784 = vmatpush2.msra.mxu1 %v656_v19  ;;  %v618_v46 = vld [vmem:[#allocation9 + $0x2c0] sm:$0xff]  ;;  %v611_v52 = vld [vmem:[#allocation9 + $0x288] sm:$0xff]  ;;  %v625_v53 = vld [vmem:[#allocation9 + $0x2f8] sm:$0xff] }
  0xd2   : > { %714 = vmatprep.subr.mxu0 %v651_v10  ;;  %785 = vmatprep.subr.mxu1 %v653_v21  ;;  %v614_v50 = vld [vmem:[#allocation9 + $0x2a0] sm:$0xff]  ;;  %v624_v55 = vld [vmem:[#allocation9 + $0x2f0] sm:$0xff]  ;;  %v607_v56 = vld [vmem:[#allocation9 + $0x268] sm:$0xff] }
  0xd3   : > { %715 = vmatpush2.msra.mxu0 %v650_v12  ;;  %786 = vmatpush2.msra.mxu1 %v652_v23  ;;  %v610_v54 = vld [vmem:[#allocation9 + $0x280] sm:$0xff]  ;;  %v621_v57 = vld [vmem:[#allocation9 + $0x2d8] sm:$0xff]  ;;  %v620_v59 = vld [vmem:[#allocation9 + $0x2d0] sm:$0xff] }
  0xd4   : > { %716 = vmatprep.subr.mxu0 %v647_v14  ;;  %787 = vmatprep.subr.mxu1 %v649_v25  ;;  %v606_v58 = vld [vmem:[#allocation9 + $0x260] sm:$0xff]  ;;  %v603_v60 = vld [vmem:[#allocation9 + $0x248] sm:$0xff]  ;;  %v617_v61 = vld [vmem:[#allocation9 + $0x2b8] sm:$0xff] }
  0xd5   : > { %717 = vmatpush2.msra.mxu0 %v646_v16  ;;  %788 = vmatpush2.msra.mxu1 %v648_v27  ;;  %v602_v62 = vld [vmem:[#allocation9 + $0x240] sm:$0xff]  ;;  %v616_v63 = vld [vmem:[#allocation9 + $0x2b0] sm:$0xff]  ;;  %v599_v0 = vld [vmem:[#allocation9 + $0x228] sm:$0xff] }
  0xd6   : > { %718 = vmatprep.subr.mxu0 %v643_v18  ;;  %789 = vmatprep.subr.mxu1 %v645_v29  ;;  %v613_v1 = vld [vmem:[#allocation9 + $0x298] sm:$0xff]  ;;  %v598_v2 = vld [vmem:[#allocation9 + $0x220] sm:$0xff]  ;;  %v612_v3 = vld [vmem:[#allocation9 + $0x290] sm:$0xff] }
  0xd7   : > { %719 = vmatpush2.msra.mxu0 %v642_v20  ;;  %790 = vmatpush2.msra.mxu1 %v644_v31  ;;  %v595_v4 = vld [vmem:[#allocation9 + $0x208] sm:$0xff]  ;;  %v609_v5 = vld [vmem:[#allocation9 + $0x278] sm:$0xff]  ;;  %v594_v6 = vld [vmem:[#allocation9 + $0x200] sm:$0xff] }
  0xd8   : > { %720 = vmatprep.subr.mxu0 %v639_v22  ;;  %791 = vmatprep.subr.mxu1 %v641_v33  ;;  %v608_v7 = vld [vmem:[#allocation9 + $0x270] sm:$0xff]  ;;  %v605_v9 = vld [vmem:[#allocation9 + $0x258] sm:$0xff]  ;;  %v864_v16 = vld [vmem:[#allocation13 + $0x78] sm:$0xff] }
  0xd9   : > { %721 = vmatpush2.msra.mxu0 %v638_v24  ;;  %792 = vmatpush2.msra.mxu1 %v640_v35  ;;  %v522_v8 = vld [vmem:[%s435_s4] sm:$0xff]  ;;  %v860_v20 = vld [vmem:[#allocation13 + $0x58] sm:$0xff]  ;;  %v658_v35 = vld [vmem:[#allocation10] sm:$0xf] }
  0xda   : > { %722 = vmatprep.subr.mxu0 %v635_v26  ;;  %793 = vmatprep.subr.mxu1 %v637_v38  ;;  %v604_v10 = vld [vmem:[#allocation9 + $0x250] sm:$0xff]  ;;  %v601_v11 = vld [vmem:[#allocation9 + $0x238] sm:$0xff]  ;;  %v856_v24 = vld [vmem:[#allocation13 + $0x38] sm:$0xff] }
  0xdb   : > { %723 = vmatpush2.msra.mxu0 %v634_v28  ;;  %794 = vmatpush2.msra.mxu1 %v636_v39  ;;  %v600_v12 = vld [vmem:[#allocation9 + $0x230] sm:$0xff]  ;;  %v597_v13 = vld [vmem:[#allocation9 + $0x218] sm:$0xff]  ;;  %v852_v28 = vld [vmem:[#allocation13 + $0x18] sm:$0xff] }
  0xdc   : > { %724 = vmatprep.subr.mxu0 %v631_v30  ;;  %795 = vmatprep.subr.mxu1 %v633_v43  ;;  %v596_v14 = vld [vmem:[#allocation9 + $0x210] sm:$0xff]  ;;  %v863_v17 = vld [vmem:[#allocation13 + $0x70] sm:$0xff] }
  0xdd   : > { %725 = vmatpush2.msra.mxu0 %v630_v32  ;;  %796 = vmatpush2.msra.mxu1 %v632_v45  ;;  %v862_v18 = vld [vmem:[#allocation13 + $0x68] sm:$0xff]  ;;  %v861_v19 = vld [vmem:[#allocation13 + $0x60] sm:$0xff]  ;;  %v859_v21 = vld [vmem:[#allocation13 + $0x50] sm:$0xff]  ;;  %v660_v32 = vlaneseq }
  0xde   : > { %726 = vmatprep.subr.mxu0 %v627_v34  ;;  %797 = vmatprep.subr.mxu1 %v629_v47  ;;  %v858_v22 = vld [vmem:[#allocation13 + $0x48] sm:$0xff]  ;;  %v857_v23 = vld [vmem:[#allocation13 + $0x40] sm:$0xff]  ;;  %v855_v25 = vld [vmem:[#allocation13 + $0x30] sm:$0xff] }
  0xdf   : > { %727 = vmatpush2.msra.mxu0 %v626_v36  ;;  %744 = vmatprep.mubr.f32.mxu0 %v526_v48  ;;  %v854_v26 = vld [vmem:[#allocation13 + $0x28] sm:$0xff]  ;;  %v853_v27 = vld [vmem:[#allocation13 + $0x20] sm:$0xff]  ;;  %v851_v29 = vld [vmem:[#allocation13 + $0x10] sm:$0xff]  ;;  %v661_v33 = vshrl.u32 %v660_v32, 7 }
  0xe0   : > { %728 = vmatprep.subr.mxu0 %v623_v37  ;;  %798 = vmatpush2.msra.mxu1 %v628_v51  ;;  %v850_v30 = vld [vmem:[#allocation13 + $0x8] sm:$0xff]  ;;  %v849_v31 = vld [vmem:[#allocation13] sm:$0xff] }
  0xe1   : > { %729 = vmatpush2.msra.mxu0 %v622_v42  ;;  %799 = vmatprep.subr.mxu1 %v625_v53  ;;  %v662_v34 = vsub.s32 0, %v661_v33  ;;  %v666_v36 = vsub.s32 1, %v661_v33  ;;  %v670_v47 = vsub.s32 2, %v661_v33 }
  0xe2   : > { %730 = vmatprep.subr.mxu0 %v619_v44  ;;  %800 = vmatpush2.msra.mxu1 %v624_v55  ;;  %v674_v44 = vsub.s32 3, %v661_v33 }
  0xe3   : > { %731 = vmatpush2.msra.mxu0 %v618_v46  ;;  %801 = vmatprep.subr.mxu1 %v621_v57  ;;  %v663_v37 = vrot.slane %v658_v35, %v662_v34  ;;  %v667_v38 = vrot.slane %v658_v35, %v666_v36 }
  0xe4   : > { %732 = vmatprep.subr.mxu0 %v615_v49  ;;  %802 = vmatpush2.msra.mxu1 %v620_v59 }
  0xe5   : > { %733 = vmatpush2.msra.mxu0 %v614_v50  ;;  %803 = vmatprep.subr.mxu1 %v617_v61  ;;  %v671_v50 = vrot.slane %v658_v35, %v670_v47  ;;  %v841_v61 = vld [vmem:[#allocation18] sm:$0xff] }
  0xe6   : > { %734 = vmatprep.subr.mxu0 %v611_v52  ;;  %804 = vmatpush2.msra.mxu1 %v616_v63 }
  0xe7   : > { %735 = vmatpush2.msra.mxu0 %v610_v54  ;;  %805 = vmatprep.subr.mxu1 %v613_v1 }
  0xe8   : > { %736 = vmatprep.subr.mxu0 %v607_v56  ;;  %806 = vmatpush2.msra.mxu1 %v612_v3 }
  0xe9   : > { %737 = vmatpush2.msra.mxu0 %v606_v58  ;;  %807 = vmatprep.subr.mxu1 %v609_v5 }
  0xea   : > { %738 = vmatprep.subr.mxu0 %v603_v60  ;;  %808 = vmatpush2.msra.mxu1 %v608_v7 }
  0xeb   : > { %739 = vmatpush2.msra.mxu0 %v602_v62  ;;  %809 = vmatprep.subr.mxu1 %v605_v9 }
  0xec   : > { %740 = vmatprep.subr.mxu0 %v599_v0  ;;  %810 = vmatpush2.msra.mxu1 %v604_v10 }
  0xed   : > { %741 = vmatpush2.msra.mxu0 %v598_v2  ;;  %815 = vmatprep.mubr.f32.mxu1 %v526_v48  ;;  %v675_v48 = vrot.slane %v658_v35, %v674_v44 }
  0xee   : > { %742 = vmatprep.subr.mxu0 %v595_v4  ;;  %811 = vmatprep.subr.mxu1 %v601_v11 }
  0xef   : > { %743 = vmatpush2.msra.mxu0 %v594_v6  ;;  %812 = vmatpush2.msra.mxu1 %v600_v12 }
  0xf0   : > { %745 = vmatmul.mubr.f32.vlgmr.msra.gmra.mxu0 %v522_v8  ;;  %813 = vmatprep.subr.mxu1 %v597_v13 }
  0xf1   : > { %814 = vmatpush2.msra.mxu1 %v596_v14  ;;  %1170 = vmatprep.subr.mxu0 %v1642_v15 }
  0xf2   : > { %816 = vmatmul.mubr.f32.vlgmr.msra.gmra.mxu1 %v522_v8  ;;  %1171 = vmatpush3.msra.mxu0 %v864_v16 }
  0xf3   : > { %1172 = vmatprep.subr.mxu0 %v1642_v15  ;;  %1202 = vmatprep.mubr.msk.f32.mxu0 %vm1643_vm0, %v1642_v15 }
  0xf4   : > { %1173 = vmatpush3.msra.mxu0 %v863_v17 }
  0xf5   : > { %1174 = vmatprep.subr.mxu0 %v1642_v15 }
  0xf6   : > { %1175 = vmatpush3.msra.mxu0 %v862_v18 }
  0xf7   : > { %1176 = vmatprep.subr.mxu0 %v1642_v15 }
  0xf8   : > { %1177 = vmatpush3.msra.mxu0 %v861_v19 }
  0xf9   : > { %1178 = vmatprep.subr.mxu0 %v1642_v15 }
  0xfa   : > { %1179 = vmatpush3.msra.mxu0 %v860_v20 }
  0xfb   : > { %1180 = vmatprep.subr.mxu0 %v1642_v15 }
  0xfc   : > { %1181 = vmatpush3.msra.mxu0 %v859_v21 }
  0xfd   : > { %1182 = vmatprep.subr.mxu0 %v1642_v15 }
  0xfe   : > { %1183 = vmatpush3.msra.mxu0 %v858_v22 }
  0xff   : > { %1184 = vmatprep.subr.mxu0 %v1642_v15 }
 0x100   : > { %1185 = vmatpush3.msra.mxu0 %v857_v23 }
 0x101   : > { %1186 = vmatprep.subr.mxu0 %v1642_v15 }
 0x102   : > { %1187 = vmatpush3.msra.mxu0 %v856_v24 }
 0x103   : > { %1188 = vmatprep.subr.mxu0 %v1642_v15 }
 0x104   : > { %1189 = vmatpush3.msra.mxu0 %v855_v25 }
 0x105   : > { %1190 = vmatprep.subr.mxu0 %v1642_v15 }
 0x106   : > { %1191 = vmatpush3.msra.mxu0 %v854_v26 }
 0x107   : > { %1192 = vmatprep.subr.mxu0 %v1642_v15 }
 0x108   : > { %1193 = vmatpush3.msra.mxu0 %v853_v27 }
 0x109   : > { %1194 = vmatprep.subr.mxu0 %v1642_v15 }
 0x10a   : > { %1195 = vmatpush3.msra.mxu0 %v852_v28 }
 0x10b   : > { %1196 = vmatprep.subr.mxu0 %v1642_v15 }
 0x10c   : > { %1197 = vmatpush3.msra.mxu0 %v851_v29 }
 0x10d   : > { %1198 = vmatprep.subr.mxu0 %v1642_v15 }
 0x10e   : > { %1199 = vmatpush3.msra.mxu0 %v850_v30 }
 0x10f   : > { %1200 = vmatprep.subr.mxu0 %v1642_v15 }
 0x110   : > { %1201 = vmatpush3.msra.mxu0 %v849_v31 }
 0x1b0   : > { %v746_v39 = vpop.f32.mrf.mxu0 }
 0x1b1   : > { %v747_v40 = vadd.f32 %v746_v39, %v663_v37 }
 0x1b2   : > { %v748_v41 = vpop.f32.mrf.mxu0  ;;  %v817_v46 = vpop.f32.mrf.mxu1 }
 0x1b3   : > { %v1141_v42 = vmul.f32 -1.442695, %v747_v40  ;;  %v749_v43 = vadd.f32 %v748_v41, %v667_v38  ;;  %v818_v52 = vadd.f32 %v817_v46, %v671_v50 }
 0x1b4   : > { %v819_v49 = vpop.f32.mrf.mxu1 }
 0x1b5   : > { %1324 = vpow2.f32 %v1141_v42  ;;  %v1142_v45 = vmul.f32 -1.442695, %v749_v43  ;;  %v820_v51 = vadd.f32 %v819_v49, %v675_v48 }
 0x1b7   : > { %1326 = vpow2.f32 %v1142_v45  ;;  %v1143_v53 = vmul.f32 -1.442695, %v820_v51 }
 0x1b8   : > { %1328 = vtanh.f32 %v818_v52 }
 0x1b9   : > { %1330 = vpow2.f32 %v1143_v53 }
 0x1c2   : > { %v1325_v54 = vpop.eup %1324 }
 0x1c3   : > { %v825_v55 = vadd.f32 1.0, %v1325_v54 }
 0x1c4   : > { %v1327_v56 = vpop.eup %1326 }
 0x1c5   : > { %1332 = vrcp.f32 %v825_v55  ;;  %v831_v57 = vadd.f32 1.0, %v1327_v56  ;;  %v1329_v58 = vpop.eup %1328 }
 0x1c6   : > { %v1331_v59 = vpop.eup %1330 }
 0x1c7   : > { %1334 = vrcp.f32 %v831_v57  ;;  %v838_v63 = vadd.f32 1.0, %v1331_v59 }
 0x1c9   : > { %1336 = vrcp.f32 %v838_v63 }
 0x1d2   : > { %v1333_v60 = vpop.eup %1332 }
 0x1d3   : > { %v843_v1 = vmul.f32 %v1333_v60, %v1329_v58 }
 0x1d4   : > { %v1335_v62 = vpop.eup %1334 }
 0x1d5   : > { %v842_v0 = vmul.f32 %v1335_v62, %v841_v61 }
 0x1d6   : > { %v1337_v3 = vpop.eup %1336 }
 0x1d7   : > { %v844_v2 = vadd.f32 %v843_v1, %v842_v0 }
 0x1d9   : > { %1338 = vtanh.f32 %v844_v2  ;;  %847 = vst [vmem:[#allocation18] sm:$0xff] %v844_v2 }
 0x1e6   : > { %v1339_v4 = vpop.eup %1338 }
 0x1e7   : > { %v846_v5 = vmul.f32 %v1339_v4, %v1337_v3 }
 0x1e9   : > { %1203 = vmatmul.mubr.f32.vlgmr.msra.gmra.mxu0 %v846_v5  ;;  %848 = vst [vmem:[#allocation16] sm:$0xff] %v846_v5 }
 0x1ea   : > { %1511 = shalt.err (!%p1508_p6)
}
 0x1eb   : > { %p2018_p2 = pmov %p2017_p8  ;;  %s1645_s0 = smov [#allocation18]  }
 0x1ec   : > { %s979_s4 = sshll.u32 %s1645_s0, 4  ;;  %s980_s4 = int_to_ptr.vmem [resolvable:$true] %s979_s4 }
 0x1ed   : > { %1229 = dma.vmem_to_hbm [thread:$0]  (%p2018_p2), %s969_s30, 128, %s1978_s11, [#allocation17]  }
 0x1ee   : > { %s1522_s7 = scalar_lea.vmem %s980_s4, 128  ;;  %p2019_p4 = pmov %p2018_p2 }
 0x1ef   : > { %p1523_p5 = scmp.ne.s32.totalorder %s980_s4, %s1522_s7  ;;  %p1529_p3 = scmp.lt.s32.totalorder %s980_s4, %s980_s4 }
 0x1f0   : > { %p1530_p1 = scmp.lt.s32.totalorder %s1522_s7, %s1522_s7 }
 0x1f1   : > { %p1524_p12 = pnand %p1523_p5, %p2019_p4 }
 0x1f2   : > { %p1531_p8 = por %p1530_p1, %p1529_p3 }
 0x1f3   : > { %p1525_p13 = pneg %p1524_p12 }
 0x1f5   : > { %p1532_p7 = pnand %p1531_p8, %p1525_p13 }
 0x1f7   : > { %1535 = shalt.err (!%p1532_p7)
}
 0x1f8   : > { %p2020_p9 = pmov %p2018_p2  ;;  %v1144_v6 = vld [vmem:[%s1976_s9] ss:$0 sm:$0xff]  ;;  %s1146_s14 = sshll.u32 %s1733_s27, 7 }
 0x1f9   : > { %s957_s17 = sshll.u32 %s487_s5, 4  ;;  %s1924_s20 = scalar_lea.hbm %s1977_s10, %s1146_s14  ;;  %s958_s17 = int_to_ptr.vmem [resolvable:$true] %s957_s17 }
 0x1fa   : > { %1231 = dma.vmem_to_hbm [thread:$0]  (%p2020_p9), %s980_s4, 128, %s1979_s12, [#allocation17]  }
 0x1fb   : > { %s944_s8 = scalar_lea.sflag [#allocation6], %s433_s23  ;;  %s1546_s0 = scalar_lea.vmem %s958_s17, 128 }
 0x1fc   : > { %p1547_p11 = scmp.ne.s32.totalorder %s958_s17, %s1546_s0  ;;  %p2021_p10 = scmp.ne.s32.totalorder %s2003_s26, 0 }
 0x1fd   : > { %s1646_s4 = smov [#allocation15]  }
 0x1fe   : > { %p1548_p0 = pnand %p1547_p11, %p2021_p10  ;;  %s1550_s7 = sshll.u32 %s1646_s4, 4  ;;  %s1551_s7 = int_to_ptr.vmem [resolvable:$false] %s1550_s7 }
 0x1ff   : > { %s1552_s28 = scalar_lea.vmem %s1551_s7, 256  ;;  %p1553_p2 = scmp.lt.s32.totalorder %s958_s17, %s1551_s7 }
 0x200   : > { %p1549_p6 = pneg %p1548_p0  ;;  %p1554_p5 = scmp.lt.s32.totalorder %s1552_s28, %s1546_s0 }
 0x202   : > { %p1555_p4 = por %p1554_p5, %p1553_p2 }
 0x204   : > { %p1556_p12 = pnand %p1555_p4, %p1549_p6 }
 0x2a9   : > { %v938_v7 = vpop.f32.mrf.mxu0 }
 0x2aa   : > { %v939_v8 = vadd.f32 %v1144_v6, %v938_v7 }
 0x2ab   : > { %v1204_v9 = vpop.f32.mrf.mxu0 }
 0x2ac   : > { %942 = vst [vmem:[%s487_s5] sm:$0xff] %v939_v8 }
 0x2ad   : > { %1559 = shalt.err (!%p1556_p12)
}
 0x2ae   : > { %s1560_s13 = scalar_lea.hbm %s1924_s20, 128  ;;  %s1564_s29 = scalar_lea.hbm %s1977_s10, 1024 }
 0x2af   : > { %p1561_p13 = scmp.ne.s32.totalorder %s1924_s20, %s1560_s13  ;;  %p1565_p8 = scmp.lt.s32.totalorder %s1924_s20, %s1977_s10 }
 0x2b0   : > { %p1566_p7 = scmp.lt.s32.totalorder %s1564_s29, %s1560_s13 }
 0x2b1   : > { %p1562_p3 = pnand %p1561_p13, %p2021_p10 }
 0x2b2   : > { %p1567_p9 = por %p1566_p7, %p1565_p8 }
 0x2b3   : > { %p1563_p1 = pneg %p1562_p3 }
 0x2b5   : > { %p1568_p11 = pnand %p1567_p9, %p1563_p1 }
 0x2b7   : > { %1571 = shalt.err (!%p1568_p11)
}
 0x2b8   : > { %1227 = dma.vmem_to_hbm [thread:$0]  (%p2021_p10), %s958_s17, 128, %s1924_s20, %s944_s8  }
 0x2b9   : > { %p2022_p0 = scmp.eq.s32.totalorder %s1733_s27, 7 }
 0x2bb   : > { %1609 = dma.done.wait (%p2022_p0), [#allocation17], 256   ;;  %p2023_p6 = pmov %p2022_p0 }
 0x2bd   : > { %1611 = vsyncadd (%p2023_p6), [#allocation17], 4294967040 }
 0x2be PF: > { %p1276_p2 = scmp.ge.s32.totalorder %s1630_s24, 2  ;;  %s999_s14 = sand.u32 1, %s1618_s21  }
 0x2bf   : > { %p2024_p5 = scmp.ne.s32.totalorder %s2004_s18, 0  ;;  %s1000_s30 = scalar_lea.sflag [#allocation6], %s999_s14 }
 0x2c1   : > { %p1258_p4 = pnand %p1276_p2, %p2024_p5 }
 0x2c3   : > { %p1259_p12 = pneg %p1258_p4 }
 0x2c5   : > { %1613 = dma.done.wait (%p1259_p12), %s1000_s30, 128  }
 0x2c6   : > { %1615 = vsyncadd (%p1259_p12), %s1000_s30, 4294967168  ;;  %s2025_s26 = sld [smem:[#allocation26_spill]]  ;;  %p30_p10 = scmp.ge.s32.totalorder %s1801_s25, 10  }
 0x2c7   : > { %s2026_s23 = sld [smem:[#allocation27_spill]]  ;;  %s2027_s21 = smov %s1622_s22 }
 0x2c8   : > { %s2029_s24 = smov %s1801_s25  ;;  %32 = sbr.rel (!%p30_p10) target bundleno = 15 (0xf), region = 146 }
 0x2cc   : > { %s2028_s22 = smov %s2025_s26 }
 0x2cd   :  { %1005 = vsyncpa [#allocation5], 1 }
 0x2ce   :  { %1007 = vsyncpa [#allocation5 + $0x1], 1 }
 0x2cf   :  { %1008 = vsyncpa [#allocation8], 1 }
 0x2d0   :  { %1010 = vsyncpa [#allocation8 + $0x1], 1 }
 0x2d1   :  { %1011 = vsyncpa [#allocation11], 1 }
 0x2d2   :  { %1012 = vsyncpa [#allocation14], 1 }
 0x2d3   :  { %1013 = vsyncpa [#allocation6], 1 }
 0x2d4   :  { %1015 = vsyncpa [#allocation6 + $0x1], 1 }
 0x2d5   :  { %1016 = vsyncpa [#allocation17], 1 }

</bundles_post_ra>
